<compile_context>
chip_gen: v7x
topology: tpu7x:2x2x1
jax: 0.10.0
libtpu: 0.0.40
codegen_flags: <defaults>
</compile_context>

<pallas_src>
import jax
import jax.numpy as jnp
from jax.experimental import pallas as pl
from jax.experimental.pallas import tpu as pltpu


def _round_up(n: int, m: int) -> int:
    return ((n + m - 1) // m) * m


def make_conv2d_kernel(kh: int, kw: int, rp: int, wp: int):
    """Kernel computing corr2d + bias on one packed (rp, wp) slab of images."""
    n_taps = kh * kw

    def conv2d_kernel(w_ref, b_ref, x_ref, o_ref):
        xv = x_ref[0]                                    # (rp, wp) f32, one load
        # Hoist all scalar SMEM reads above the MAC chain.
        taps = [w_ref[t] for t in range(n_taps)]
        bias = b_ref[0]

        # Tap (0,0) needs no shift; fold the bias into it (saves one
        # full-tile broadcast-init pass).
        acc0 = xv * taps[0] + bias
        acc1 = None

        for di in range(kh):
            # Row shift: sublane roll (XLU slot, overlaps the VPU MACs).
            x_row = xv if di == 0 else pltpu.roll(xv, shift=rp - di, axis=0)
            for dj in range(kw):
                t = di * kw + dj
                if t == 0:
                    continue
                # Column shift: lane roll.  Cross-image / wrapped lanes only
                # land in each image's (kh-1, kw-1) cropped border.
                shifted = x_row if dj == 0 else pltpu.roll(x_row, shift=wp - dj, axis=1)
                term = shifted * taps[t]
                # Two partial accumulators keep the mul->add chain from
                # serializing (no f32 FMA on v5e/v6e).
                if t % 2 == 1:
                    acc1 = term if acc1 is None else acc1 + term
                else:
                    acc0 = acc0 + term

        out = acc0 if acc1 is None else acc0 + acc1
        o_ref[0] = out                                   # lane-dense unmasked store

    return conv2d_kernel


def conv2d_forward_batched(x, weight, bias, *, images_per_step=None):
    """Batched Pallas Conv2D.forward.

    x:      (B, H, W) float32   -- B independent images, shared weight/bias
    weight: (kh, kw)  float32
    bias:   (1,)      float32
    returns (B, H - kh + 1, W - kw + 1) float32
    """
    B, H, W = x.shape
    kh, kw = weight.shape
    oh, ow = H - kh + 1, W - kw + 1

    x = x.astype(jnp.float32)
    w_flat = weight.astype(jnp.float32).reshape(-1)   # 1D SMEM: no 2D word padding
    b_flat = bias.astype(jnp.float32).reshape(-1)

    # ---- packing geometry ---------------------------------------------------
    # lp images side-by-side along the 128-lane axis, sp image-rows stacked
    # along sublanes per grid step.
    lp = max(1, 128 // W)                    # 16 images per lane row for W=8
    wp = _round_up(lp * W, 128)              # packed lane width (multiple of 128)

    rows_needed = -(-B // lp)                # image-rows required to cover the batch
    if images_per_step is not None:
        sp = max(1, -(-images_per_step // lp))
        sp = min(sp, rows_needed)
    else:
        sp = min(rows_needed, 64)            # ~64*H sublanes/step (~192 KiB at H=6)
        if rows_needed >= 8:                 # enough work: keep >= 2 grid steps so
            sp = min(sp, -(-rows_needed // 2))   # megacore gets one block per core
    # VMEM cap: double-buffered in+out stays <= ~4 MiB -> fits v5e's 16 MiB
    # scoped default and v7x's 64 MiB physical VMEM without flag overrides.
    sp = min(sp, max(1, 2048 // H))

    rp = _round_up(sp * H, 8)                # packed sublane height (multiple of 8)
    ipg = sp * lp                            # images per grid step
    ng = -(-B // ipg)                        # grid steps
    b_pad = ng * ipg

    # ---- pack: (B,H,W) -> (ng, rp, wp); image (g, s, l) occupies rows
    # [s*H, (s+1)*H) and lanes [l*W, (l+1)*W) of slab g -------------------------
    xb = jnp.pad(x, ((0, b_pad - B), (0, 0), (0, 0)))
    xg = (xb.reshape(ng, sp, lp, H, W)
            .transpose(0, 1, 3, 2, 4)
            .reshape(ng, sp * H, lp * W))
    x_packed = jnp.pad(xg, ((0, 0), (0, rp - sp * H), (0, wp - lp * W)))

    kernel = make_conv2d_kernel(kh, kw, rp, wp)

    cost = pl.CostEstimate(
        flops=2 * ng * rp * wp * kh * kw,
        transcendentals=0,
        bytes_accessed=2 * ng * rp * wp * 4,   # packed input + packed output
    )

    out_packed = pl.pallas_call(
        kernel,
        out_shape=jax.ShapeDtypeStruct((ng, rp, wp), jnp.float32),
        grid=(ng,),
        in_specs=[
            pl.BlockSpec(memory_space=pltpu.MemorySpace.SMEM),   # weight taps
            pl.BlockSpec(memory_space=pltpu.MemorySpace.SMEM),   # bias
            pl.BlockSpec((1, rp, wp), lambda i: (i, 0, 0)),      # one packed slab / step
        ],
        out_specs=pl.BlockSpec((1, rp, wp), lambda i: (i, 0, 0)),
        compiler_params=pltpu.CompilerParams(
            dimension_semantics=("parallel",)),                  # shard slabs across TCs
        cost_estimate=cost,
    )(w_flat, b_flat, x_packed)

    # ---- unpack + per-image crop to (oh, ow) ---------------------------------
    out = (out_packed[:, :sp * H, :lp * W]
           .reshape(ng, sp, H, lp, W)
           .transpose(0, 1, 3, 2, 4)
           .reshape(b_pad, H, W))
    return out[:B, :oh, :ow]


def conv2d_forward(x, weight, bias):
    """Single-image Conv2D.forward (module semantics): corr2d(x, weight) + bias."""
    return conv2d_forward_batched(x[None], weight, bias)[0]


def corr2d_ref(x, k):
    """Pure-JAX reference matching the PyTorch corr2d loop."""
    kh, kw = k.shape
    oh, ow = x.shape[0] - kh + 1, x.shape[1] - kw + 1
    out = jnp.zeros((oh, ow), jnp.float32)
    for di in range(kh):
        for dj in range(kw):
            out = out + x[di:di + oh, dj:dj + ow] * k[di, dj]
    return out


if __name__ == "__main__":
    key = jax.random.PRNGKey(0)
    k_x, k_w, k_b, k_g = jax.random.split(key, 4)

    H, W = 6, 8                      # X.reshape((1, 1, 6, 8)) in the module
    kernel_size = (1, 2)             # K = [[1., -1.]]

    # --- 1) Spec example: edge-detection image, K = [[1., -1.]], zero bias ----
    x_edge = jnp.ones((H, W), jnp.float32).at[:, 2:6].set(0.0)
    k_edge = jnp.array([[1.0, -1.0]], jnp.float32)
    b_zero = jnp.zeros((1,), jnp.float32)
    out_edge = jax.block_until_ready(conv2d_forward(x_edge, k_edge, b_zero))
    ref_edge = corr2d_ref(x_edge, k_edge)
    assert out_edge.shape == (H - 1 + 1, W - 2 + 1)
    assert jnp.allclose(out_edge, ref_edge, atol=1e-5), "edge-detect mismatch"

    # --- 2) Module init: weight ~ U[0,1) (torch.rand), bias = 0, random x -----
    weight = jax.random.uniform(k_w, kernel_size, dtype=jnp.float32)
    bias = jnp.zeros((1,), jnp.float32)   # torch.zeros(1)
    x1 = jax.random.normal(k_x, (H, W), dtype=jnp.float32)
    out1 = jax.block_until_ready(conv2d_forward(x1, weight, bias))
    ref1 = corr2d_ref(x1, weight) + bias[0]
    assert jnp.allclose(out1, ref1, atol=1e-5), "single-image mismatch"

    # --- 3) Batched packed path, 2 grid steps (megacore), non-zero bias -------
    B = 64
    bias_nz = jnp.array([0.5], jnp.float32)
    xb = jax.random.normal(k_b, (B, H, W), dtype=jnp.float32)
    outb = jax.block_until_ready(
        conv2d_forward_batched(xb, weight, bias_nz, images_per_step=32))
    refb = jnp.stack([corr2d_ref(xb[i], weight) + bias_nz[0] for i in range(B)])
    assert outb.shape == (B, H - 1 + 1, W - 2 + 1)
    assert jnp.allclose(outb, refb, atol=1e-5), "batched mismatch"

    # --- 4) Generic kernel_size (exercises the sublane-roll tap path) ---------
    k33 = jax.random.uniform(k_g, (3, 3), dtype=jnp.float32)
    out33 = jax.block_until_ready(conv2d_forward_batched(xb, k33, bias_nz))
    ref33 = jnp.stack([corr2d_ref(xb[i], k33) + bias_nz[0] for i in range(B)])
    assert out33.shape == (B, H - 3 + 1, W - 3 + 1)
    assert jnp.allclose(out33, ref33, atol=1e-5), "3x3 mismatch"

    print("KERNEL_OK")
</pallas_src>

<mosaic_0001>
module attributes {stable_mosaic.version = 11 : i64} {
  func.func @conv2d_kernel(%arg0: i32, %arg1: memref<2xf32, #tpu.memory_space<smem>>, %arg2: memref<1xf32, #tpu.memory_space<smem>>, %arg3: memref<1x8x128xf32, #tpu.memory_space<vmem>>, %arg4: memref<1x8x128xf32, #tpu.memory_space<vmem>>) attributes {dimension_semantics = [#tpu.dimension_semantics<parallel>], iteration_bounds = array<i64: 1>, scalar_prefetch = 0 : i64, scratch_operands = 0 : i64, tpu.core_type = #tpu.core_type<tc>, window_params = [{transform_indices = @transform_0, window_bounds = array<i64: 2>}, {transform_indices = @transform_1, window_bounds = array<i64: 1>}, {transform_indices = @transform_2, window_bounds = array<i64: 1, 8, 128>}, {transform_indices = @transform_3, window_bounds = array<i64: 1, 8, 128>}]} {
    %c0 = arith.constant 0 : index
    %c0_0 = arith.constant 0 : index
    %c0_1 = arith.constant 0 : index
    %0 = vector.load %arg3[%c0, %c0_0, %c0_1] : memref<1x8x128xf32, #tpu.memory_space<vmem>>, vector<1x8x128xf32>
    %1 = vector.shape_cast %0 : vector<1x8x128xf32> to vector<8x128xf32>
    %c0_2 = arith.constant 0 : index
    %2 = memref.load %arg1[%c0_2] : memref<2xf32, #tpu.memory_space<smem>>
    %c1 = arith.constant 1 : index
    %3 = memref.load %arg1[%c1] : memref<2xf32, #tpu.memory_space<smem>>
    %c0_3 = arith.constant 0 : index
    %4 = memref.load %arg2[%c0_3] : memref<1xf32, #tpu.memory_space<smem>>
    %5 = vector.broadcast %2 : f32 to vector<8x128xf32>
    %6 = arith.mulf %1, %5 : vector<8x128xf32>
    %7 = vector.broadcast %4 : f32 to vector<8x128xf32>
    %8 = arith.addf %6, %7 : vector<8x128xf32>
    %c127_i32 = arith.constant 127 : i32
    %9 = tpu.dynamic_rotate %1 by %c127_i32 dim 1 : vector<8x128xf32>, i32 -> vector<8x128xf32>
    %10 = vector.broadcast %3 : f32 to vector<8x128xf32>
    %11 = arith.mulf %9, %10 : vector<8x128xf32>
    %12 = arith.addf %8, %11 : vector<8x128xf32>
    %c0_4 = arith.constant 0 : index
    %c0_5 = arith.constant 0 : index
    %c0_6 = arith.constant 0 : index
    %13 = vector.load %arg4[%c0_4, %c0_5, %c0_6] : memref<1x8x128xf32, #tpu.memory_space<vmem>>, vector<1x8x128xf32>
    %14 = vector.shape_cast %13 : vector<1x8x128xf32> to vector<8x128xf32>
    %15 = vector.shape_cast %12 : vector<8x128xf32> to vector<1x8x128xf32>
    tpu.vector_store %arg4[%c0_4, %c0_5, %c0_6], %15 {strides = array<i32>} : memref<1x8x128xf32, #tpu.memory_space<vmem>>, vector<1x8x128xf32>,
    return
  }
  func.func @transform_0(%arg0: i32) -> i32 {
    %c0_i32 = arith.constant 0 : i32
    %c0_i32_0 = arith.constant 0 : i32
    return %c0_i32 : i32
  }
  func.func @transform_1(%arg0: i32) -> i32 {
    %c0_i32 = arith.constant 0 : i32
    %c0_i32_0 = arith.constant 0 : i32
    return %c0_i32 : i32
  }
  func.func @transform_2(%arg0: i32) -> (i32, i32, i32) {
    %c0_i32 = arith.constant 0 : i32
    %c0_i32_0 = arith.constant 0 : i32
    %c0_i32_1 = arith.constant 0 : i32
    return %arg0, %c0_i32, %c0_i32_0 : i32, i32, i32
  }
  func.func @transform_3(%arg0: i32) -> (i32, i32, i32) {
    %c0_i32 = arith.constant 0 : i32
    %c0_i32_0 = arith.constant 0 : i32
    %c0_i32_1 = arith.constant 0 : i32
    return %arg0, %c0_i32, %c0_i32_0 : i32, i32, i32
  }
}

</mosaic_0001>

<bundles_post_ra>
// kernel: tpu_custom_call.1
= control target key start
LH: loop header
LB: loop body
LE: loop exit
PB: predicated region body
PF: predicated region fallthrough
CT: control target
= control target key end

     0   :  { %9 = vsyncpa [#allocation6], 0  ;;  %s192_s0 = inlined_call_operand.vmem [shape: f32[2], index: 0, kind: input, shape index: {}]   ;;  %s193_s1 = inlined_call_operand.<no memory space> [shape: f32[1], index: 1, kind: input, shape index: {}]   ;;  %s194_s2 = inlined_call_operand.hbm [shape: f32[1,8,128], index: 2, kind: input, shape index: {}]   ;;  %s195_s3 = inlined_call_operand.hbm [shape: f32[1,8,128], index: 3, kind: output, shape index: {}]  }
   0x1   :  { %10 = vsyncpa [#allocation4], 0 }
   0x2   :  { %11 = vsyncpa [#allocation5], 0  ;;  %s18_s14 = sshll.u32 %s192_s0, 4  ;;  %s19_s14 = int_to_ptr.vmem [resolvable:$true] %s18_s14 }
   0x3   :  { %s76_s15 = scalar_lea.vmem %s19_s14, 16  ;;  %p81_p1 = scmp.lt.s32.totalorder %s19_s14, %s19_s14 }
   0x4   :  { %p77_p0 = scmp.ne.s32.totalorder %s19_s14, %s76_s15  ;;  %p82_p2 = scmp.lt.s32.totalorder %s76_s15, %s76_s15 }
   0x6   :  { %p83_p3 = por %p82_p2, %p81_p1 }
   0x8   :  { %p84_p4 = pnand %p83_p3, %p77_p0 }
   0xa   :  { %87 = shalt.err (!%p84_p4)
}
   0xb   :  { %s138_s16 = smov [#allocation3]   ;;  %s139_s17 = smov [#allocation7]  }
   0xc   :  { %21 = dma.vmem_to_smem %s19_s14, 16, %s138_s16, [#allocation6]  }
   0xd   :  { %s30_s18 = sshll.u32 %s139_s17, 4  ;;  %s88_s21 = scalar_lea.hbm %s194_s2, 128  ;;  %s31_s18 = int_to_ptr.vmem [resolvable:$true] %s30_s18 }
   0xe   :  { %p89_p5 = scmp.ne.s32.totalorder %s194_s2, %s88_s21  ;;  %p92_p6 = scmp.lt.u32.totalorder %s88_s21, %s194_s2 }
  0x10   :  { %p94_p7 = pnand %p92_p6, %p89_p5 }
  0x12   :  { %97 = shalt.err (!%p94_p7)
}
  0x13   :  { %s98_s25 = scalar_lea.vmem %s31_s18, 128  ;;  %p103_p9 = scmp.lt.s32.totalorder %s31_s18, %s31_s18 }
  0x14   :  { %p99_p8 = scmp.ne.s32.totalorder %s31_s18, %s98_s25  ;;  %p104_p10 = scmp.lt.s32.totalorder %s98_s25, %s98_s25 }
  0x16   :  { %p105_p11 = por %p104_p10, %p103_p9 }
  0x18   :  { %p106_p12 = pnand %p105_p11, %p99_p8 }
  0x1a   :  { %109 = shalt.err (!%p106_p12)
}
  0x1b   :  { %33 = dma.hbm_to_vmem [thread:$0]  %s194_s2, 128, %s31_s18, [#allocation4]  }
  0x1c   :  { %132 = dma.done.wait [#allocation6], 16  }
  0x1d   :  { %133 = vsyncadd [#allocation6], 4294967280 }
  0x1e   :  { %134 = dma.done.wait [#allocation4], 128  }
  0x1f   :  { %135 = vsyncadd [#allocation4], 4294967168 }
  0x20   :  { %40 = sfence }
  0x21   :  { %v41_v0 = vld [vmem:[#allocation7] sm:$0xff]  ;;  %s140_s28 = smov 127   ;;  %s42_s29 = sld [smem:[#allocation3]]  ;;  %v47_v3 = vstv %s193_s1 }
  0x22   :  { %49 = vrot.lane.b32.xlu0 %v41_v0, %s140_s28  ;;  %s71_s30 = sld [smem:[#allocation3 + $0x1]]  ;;  %s141_s2 = smov [#allocation8]  }
  0x23   :  { %s61_s6 = sshll.u32 %s141_s2, 4  ;;  %s62_s6 = int_to_ptr.vmem [resolvable:$true] %s61_s6 }
  0x24   :  { %s110_s7 = scalar_lea.vmem %s62_s6, 128  ;;  %p115_p0 = scmp.lt.s32.totalorder %s62_s6, %s62_s6 }
  0x25   :  { %p111_p13 = scmp.ne.s32.totalorder %s62_s6, %s110_s7  ;;  %p116_p1 = scmp.lt.s32.totalorder %s110_s7, %s110_s7 }
  0x27   :  { %v45_v1 = vstv %s42_s29  ;;  %p117_p2 = por %p116_p1, %p115_p0 }
  0x28   :  { %v46_v2 = vmul.f32 %v45_v1, %v41_v0  ;;  %v51_v4 = vstv %s71_s30 }
  0x29   :  { %p118_p3 = pnand %p117_p2, %p111_p13 }
  0x2a   :  { %v48_v5 = vadd.f32 %v47_v3, %v46_v2 }
  0x94   :  { %v50_v6 = vpop.permute.xlu0 %49 }
  0x95   :  { %v52_v7 = vmul.f32 %v51_v4, %v50_v6 }
  0x97   :  { %v53_v8 = vadd.f32 %v52_v7, %v48_v5 }
  0x99   :  { %54 = vst [vmem:[#allocation8] sm:$0xff] %v53_v8 }
  0x9a   :  { %121 = shalt.err (!%p118_p3)
}
  0x9b   :  { %s122_s1 = scalar_lea.hbm %s195_s3, 128 }
  0x9c   :  { %p123_p4 = scmp.ne.s32.totalorder %s195_s3, %s122_s1  ;;  %p126_p5 = scmp.lt.u32.totalorder %s122_s1, %s195_s3 }
  0x9e   :  { %p128_p6 = pnand %p126_p5, %p123_p4 }
  0xa0   :  { %131 = shalt.err (!%p128_p6)
}
  0xa1   :  { %64 = dma.vmem_to_hbm [thread:$0]  %s62_s6, 128, %s195_s3, [#allocation5]  }
  0xa2   :  { %136 = dma.done.wait [#allocation5], 128  }
  0xa3   :  { %137 = vsyncadd [#allocation5], 4294967168 }
  0xa4   :  { %68 = vsyncpa [#allocation4], 1 }
  0xa5   :  { %69 = vsyncpa [#allocation5], 1 }
  0xa6   :  { %70 = vsyncpa [#allocation6], 1 }

</bundles_post_ra>
